<compile_context>
chip_gen: v5e
topology: v5e:2x2
jax: 0.10.0
libtpu: 0.0.40
codegen_flags: <defaults>
</compile_context>

<pallas_src>
import functools

import jax
import jax.numpy as jnp
from jax import lax
from jax.experimental import pallas as pl
from jax.experimental.pallas import tpu as pltpu


# ---------------------------------------------------------------------------
# Hardware-derived sizing helpers
# ---------------------------------------------------------------------------
def _vmem_capacity_bytes():
    try:
        cap = int(pltpu.get_tpu_info().vmem_capacity_bytes)
        if cap > 0:
            return cap
    except Exception:
        pass
    return 64 * 1024 * 1024            # conservative fallback (v7x per-core VMEM)


def _pick_strip_rows(OH, OW, target_rows, want_multi):
    """Largest strip height th dividing OH with th*OW <= target_rows and a
    lane-dense y block (th*OW % 128 == 0, or th == OH => full extent)."""
    valid = [t for t in range(1, OH + 1)
             if OH % t == 0 and (t == OH or (t * OW) % 128 == 0)]
    fit = [t for t in valid if t * OW <= target_rows]
    if want_multi:                      # keep >=2 strips for v7x's 2 TensorCores
        multi = [t for t in fit if t < OH]
        if multi:
            return max(multi)
    if fit:
        return max(fit)
    return min(valid)                   # 'valid' always contains OH


def _pick_lane_tile(P, target):
    """Largest tile dividing P that is a multiple of 128 and <= target
    (falls back to the full extent P)."""
    if P <= target:
        return P
    best = 0
    t = 128
    while t < P:
        if P % t == 0 and t <= target:
            best = t
        t += 128
    return best if best else P


# ---------------------------------------------------------------------------
# Kernel A: conv as one fat MXU matmul per (image, row strip), channel-major
#           result, plus per-strip BN partial statistics.
#   x_ref : (1, th+K-1, OW, K*Cin) bf16   kw-folded, halo'd input strip
#   wt_ref: (Cout, K*K*Cin)        bf16   weights, columns ordered (kh, kw, ci)
#   y_ref : (1, Cout, th*OW)       bf16   conv activation (channel-major)
#   st_ref: (1, Cout, 2)           f32    [sum(y), centered sum((y-mean)^2)]
# ---------------------------------------------------------------------------
def _conv_kernel(x_ref, wt_ref, y_ref, st_ref, *, K, KC, th, OW):
    xs = x_ref[0]                                     # (th+K-1, OW, KC) bf16
    rows = th * OW

    # im2col: only K leading-dim slices + one K-piece lane concat (kw already
    # folded into the channel axis host-side).  Column order is (kh, kw, ci).
    pieces = [xs[kh:kh + th] for kh in range(K)]      # K x (th, OW, KC)
    patches = jnp.concatenate(pieces, axis=-1)        # (th, OW, K*KC)
    patches = patches.reshape(rows, K * KC)           # merge leading dims (free)

    # accT[co, r] = sum_k wt[co, k] * patches[r, k]  -> (Cout, rows), i.e. the
    # result is produced channel-major directly (no output transpose).
    accT = lax.dot_general(
        wt_ref[...], patches,
        dimension_numbers=(((1,), (1,)), ((), ())),
        preferred_element_type=jnp.float32)           # (Cout, rows) f32

    # Per-strip BN partials from the f32 accumulator: sum + within-strip
    # centered M2 (numerically stable Chan-style combination on the host).
    s = jnp.sum(accT, axis=1, keepdims=True)          # (Cout, 1)
    d = accT - s * (1.0 / rows)
    m2 = jnp.sum(d * d, axis=1, keepdims=True)        # (Cout, 1)
    st_ref[0, :, 0:1] = s
    st_ref[0, :, 1:2] = m2

    y_ref[0] = accT.astype(y_ref.dtype)               # dense lane store


# ---------------------------------------------------------------------------
# Kernel B: fused cat((-y, y)) + BatchNorm affine + ReLU as two per-channel
#           FMAs, channel-major, tiled over the flattened spatial (lane) axis.
#   y_ref   : (1, Cout, tp)   bf16
#   coef_ref: (Cout, 4)       f32   columns: [scale_neg, shift_neg, scale_pos, shift_pos]
#   out_ref : (1, 2*Cout, tp) out_dtype
# ---------------------------------------------------------------------------
def _mcrelu_bn_kernel(y_ref, coef_ref, out_ref, *, cout, last_act):
    y = y_ref[0].astype(jnp.float32)                  # (Cout, tp)
    c = coef_ref[...]                                 # (Cout, 4)
    out_neg = y * c[:, 0:1] + c[:, 1:2]
    out_pos = y * c[:, 2:3] + c[:, 3:4]
    if last_act:
        out_neg = jnp.maximum(out_neg, 0.0)
        out_pos = jnp.maximum(out_pos, 0.0)
    if out_ref.dtype == jnp.float32 and cout % 8 == 0:
        # sublane-aligned half stores, full 128-lane width
        out_ref[0, :cout, :] = out_neg
        out_ref[0, cout:, :] = out_pos
    else:
        # packed dtypes / odd Cout: assemble once, single dense store
        out_ref[0] = jnp.concatenate(
            [out_neg, out_pos], axis=0).astype(out_ref.dtype)


# ---------------------------------------------------------------------------
# Wrapper
# ---------------------------------------------------------------------------
def mcrelu_base_forward(x_nchw, params, *, kernelsize, stride=1,
                        pre_act=False, last_act=True, eps=1e-5,
                        row_tile=None, lane_tile=None,
                        out_dtype=jnp.float32):
    if stride != 1:
        raise NotImplementedError("stride > 1 not implemented")

    w = params["w"]                                   # (K, K, Cin, Cout) HWIO
    gamma, beta = params["gamma"], params["beta"]     # (2*Cout,), (2*Cout,)
    # NOTE: params["b"] (the conv bias) is intentionally unused: a per-channel
    # bias shifts y and its batch mean identically, so it cancels exactly in
    # the train-mode BatchNorm for both the +y and -y halves.

    N, Cin, H, W = x_nchw.shape
    K = kernelsize
    pad = K // 2
    Cout = w.shape[-1]
    OH = H + 2 * pad - K + 1
    OW = W + 2 * pad - K + 1
    Hp = H + 2 * pad
    KC = K * Cin
    P = OH * OW
    M = N * P

    vmem_cap = _vmem_capacity_bytes()
    vmem_limit = min(vmem_cap * 3 // 4, 100 * 1024 * 1024)
    budget = vmem_cap // 8

    # ---- host prep (all bf16): pre-act, NCHW->NHWC, pad, kw-fold, halo strips
    x = x_nchw
    if pre_act:
        x = jnp.maximum(x, 0.0)                       # ReLU on the f32 path
    x = jnp.transpose(x, (0, 2, 3, 1)).astype(jnp.bfloat16)
    xpad = jnp.pad(x, ((0, 0), (pad, pad), (pad, pad), (0, 0)))
    # kw folded into channels: xkw[n, h, ow, kw*Cin + ci] = xpad[n, h, ow+kw, ci]
    xkw = jnp.stack([xpad[:, :, kw:kw + OW, :] for kw in range(K)], axis=3)
    xkw = xkw.reshape(N, Hp, OW, KC)

    # Row-strip height (VMEM-budget derived; keeps >=2 strips when N == 1).
    if row_tile is not None:
        th = row_tile
        assert OH % th == 0 and (th == OH or (th * OW) % 128 == 0), (OH, OW, th)
    else:
        target_rows = max(512, min(32768, budget // 1024))
        th = _pick_strip_rows(OH, OW, target_rows, want_multi=(N == 1))
    S = OH // th
    rows = th * OW

    if S == 1:
        xstrips = xkw                                 # (N, Hp, OW, KC) already
    else:
        xstrips = jnp.stack(
            [xkw[:, s * th: s * th + th + K - 1] for s in range(S)],
            axis=1).reshape(N * S, th + K - 1, OW, KC)

    wt = w.reshape(K * K * Cin, Cout).T.astype(jnp.bfloat16)   # (Cout, K*K*Cin)

    conv = pl.pallas_call(
        functools.partial(_conv_kernel, K=K, KC=KC, th=th, OW=OW),
        grid=(N, S),
        in_specs=[
            pl.BlockSpec((1, th + K - 1, OW, KC), lambda n, s: (n * S + s, 0, 0, 0)),
            pl.BlockSpec((Cout, K * KC), lambda n, s: (0, 0)),
        ],
        out_specs=(
            pl.BlockSpec((1, Cout, rows), lambda n, s: (n, 0, s)),
            pl.BlockSpec((1, Cout, 2), lambda n, s: (n * S + s, 0, 0)),
        ),
        out_shape=(
            jax.ShapeDtypeStruct((N, Cout, P), jnp.bfloat16),   # channel-major y
            jax.ShapeDtypeStruct((N * S, Cout, 2), jnp.float32),
        ),
        compiler_params=pltpu.CompilerParams(
            dimension_semantics=("parallel", "parallel"),
            vmem_limit_bytes=vmem_limit),
    )
    y, st = conv(xstrips, wt)

    # ---- tiny host reduction: stable batch stats + folded mCReLU/BN coeffs.
    sums = st[..., 0]                                 # (N*S, Cout)
    m2s = st[..., 1]                                  # (N*S, Cout)
    mean_s = sums / rows
    mu = jnp.sum(sums, axis=0) / M
    m2 = jnp.sum(m2s, axis=0) + rows * jnp.sum((mean_s - mu) ** 2, axis=0)
    var = jnp.maximum(m2 / M, 0.0)                    # biased var (torch train BN)
    inv = lax.rsqrt(var + eps)
    g_neg, g_pos = gamma[:Cout], gamma[Cout:]
    b_neg, b_pos = beta[:Cout], beta[Cout:]
    coef = jnp.stack([
        -g_neg * inv,                  # scale for the -y half
        b_neg + g_neg * inv * mu,      # shift for the -y half
        g_pos * inv,                   # scale for the +y half
        b_pos - g_pos * inv * mu,      # shift for the +y half
    ], axis=1).astype(jnp.float32)                    # (Cout, 4)

    # ---- fused cat/BN/ReLU pass, large lane-dense tiles over OH*OW.
    if lane_tile is not None:
        tp = lane_tile
        assert P % tp == 0 and (tp == P or tp % 128 == 0), (P, tp)
    else:
        out_bytes = jnp.dtype(out_dtype).itemsize
        per_col = Cout * 2 + 2 * Cout * out_bytes     # y (bf16) + out per lane
        tp = _pick_lane_tile(P, max(128, budget // (2 * per_col)))

    bn = pl.pallas_call(
        functools.partial(_mcrelu_bn_kernel, cout=Cout, last_act=last_act),
        grid=(N, P // tp),
        in_specs=[
            pl.BlockSpec((1, Cout, tp), lambda n, j: (n, 0, j)),
            pl.BlockSpec((Cout, 4), lambda n, j: (0, 0)),
        ],
        out_specs=pl.BlockSpec((1, 2 * Cout, tp), lambda n, j: (n, 0, j)),
        out_shape=jax.ShapeDtypeStruct((N, 2 * Cout, P), out_dtype),
        compiler_params=pltpu.CompilerParams(
            dimension_semantics=("parallel", "parallel"),
            vmem_limit_bytes=vmem_limit),
    )
    out2 = bn(y, coef)

    # Channel-major output: NCHW is a free metadata reshape (no transpose pass).
    return out2.reshape(N, 2 * Cout, OH, OW)


def init_params(key, n_in, n_out, kernelsize):
    k1, k2, k3, k4 = jax.random.split(key, 4)
    return {
        "w": 0.1 * jax.random.normal(
            k1, (kernelsize, kernelsize, n_in, n_out), jnp.float32),
        "b": 0.05 * jax.random.normal(k2, (n_out,), jnp.float32),
        "gamma": 1.0 + 0.1 * jax.random.normal(k3, (2 * n_out,), jnp.float32),
        "beta": 0.05 * jax.random.normal(k4, (2 * n_out,), jnp.float32),
    }


# Pure-JAX reference implementing the torch module's semantics (conv WITH its
# bias, f32 stats, no activation quantization).  The kernel path stores the
# conv activation in bf16 and drops the bias (it cancels analytically through
# the train-mode BN), so the comparison tolerance covers bf16 rounding only.
def _reference(x_nchw, params, *, kernelsize, pre_act, last_act, eps=1e-5):
    w, b = params["w"], params["b"]
    gamma, beta = params["gamma"], params["beta"]
    pad = kernelsize // 2
    x = jnp.transpose(x_nchw, (0, 2, 3, 1)).astype(jnp.float32)
    if pre_act:
        x = jnp.maximum(x, 0.0)
    y = lax.conv_general_dilated(
        x.astype(jnp.bfloat16), w.astype(jnp.bfloat16), (1, 1),
        ((pad, pad), (pad, pad)),
        dimension_numbers=("NHWC", "HWIO", "NHWC"),
        preferred_element_type=jnp.float32) + b
    mu = y.mean(axis=(0, 1, 2))
    var = y.var(axis=(0, 1, 2))
    cat = jnp.concatenate([-y, y], axis=-1)
    cat_mu = jnp.concatenate([-mu, mu])
    cat_var = jnp.concatenate([var, var])
    out = (cat - cat_mu) * lax.rsqrt(cat_var + eps) * gamma + beta
    if last_act:
        out = jnp.maximum(out, 0.0)
    return jnp.transpose(out, (0, 3, 1, 2))


if __name__ == "__main__":
    n_in, n_out, kernelsize = 4, 8, 3
    N, H, W = 2, 16, 16

    key = jax.random.PRNGKey(0)
    kx, kp = jax.random.split(key)
    x = jax.random.normal(kx, (N, n_in, H, W), jnp.float32)   # NCHW like torch
    params = init_params(kp, n_in, n_out, kernelsize)

    configs = [
        # module defaults, auto (VMEM-derived) tiling, f32 output
        dict(pre_act=False, last_act=True, row_tile=None, lane_tile=None,
             out_dtype=jnp.float32, tol=2.5e-2),
        # multi-strip / multi-tile grid path, bf16 output knob
        dict(pre_act=True, last_act=False, row_tile=8, lane_tile=128,
             out_dtype=jnp.bfloat16, tol=6e-2),
    ]
    for cfg in configs:
        tol = cfg.pop("tol")
        fwd = jax.jit(functools.partial(
            mcrelu_base_forward, kernelsize=kernelsize, stride=1, **cfg))
        out = jax.block_until_ready(fwd(x, params))
        assert out.shape == (N, 2 * n_out, H, W), out.shape
        ref = _reference(x, params, kernelsize=kernelsize,
                         pre_act=cfg["pre_act"], last_act=cfg["last_act"])
        err = float(jnp.max(jnp.abs(out.astype(jnp.float32) - ref)))
        if err > tol:
            raise AssertionError(f"mismatch vs reference ({cfg}): {err}")

    print("KERNEL_OK")
</pallas_src>

<mosaic_0001>
module attributes {stable_mosaic.version = 11 : i64} {
  func.func @_conv_kernel(%arg0: i32, %arg1: i32, %arg2: memref<1x18x16x12xbf16, #tpu.memory_space<vmem>>, %arg3: memref<8x36xbf16, #tpu.memory_space<vmem>>, %arg4: memref<1x8x256xbf16, #tpu.memory_space<vmem>>, %arg5: memref<1x8x2xf32, #tpu.memory_space<vmem>>) attributes {dimension_semantics = [#tpu.dimension_semantics<parallel>, #tpu.dimension_semantics<parallel>], iteration_bounds = array<i64: 2, 1>, scalar_prefetch = 0 : i64, scratch_operands = 0 : i64, tpu.core_type = #tpu.core_type<tc>, window_params = [{transform_indices = @transform_0, window_bounds = array<i64: 1, 18, 16, 12>}, {pipeline_mode = #tpu.pipeline_mode<synchronous>, transform_indices = @transform_1, window_bounds = array<i64: 8, 36>}, {transform_indices = @transform_2, window_bounds = array<i64: 1, 8, 256>}, {transform_indices = @transform_3, window_bounds = array<i64: 1, 8, 2>}]} {
    %c0 = arith.constant 0 : index
    %c0_0 = arith.constant 0 : index
    %c0_1 = arith.constant 0 : index
    %c0_2 = arith.constant 0 : index
    %0 = vector.load %arg2[%c0, %c0_0, %c0_1, %c0_2] : memref<1x18x16x12xbf16, #tpu.memory_space<vmem>>, vector<1x18x16x12xbf16>
    %1 = vector.shape_cast %0 : vector<1x18x16x12xbf16> to vector<18x16x12xbf16>
    %2 = vector.extract_strided_slice %1 {offsets = [0, 0, 0], sizes = [16, 16, 12], strides = [1, 1, 1]} : vector<18x16x12xbf16> to vector<16x16x12xbf16>
    %3 = vector.extract_strided_slice %1 {offsets = [1, 0, 0], sizes = [16, 16, 12], strides = [1, 1, 1]} : vector<18x16x12xbf16> to vector<16x16x12xbf16>
    %4 = vector.extract_strided_slice %1 {offsets = [2, 0, 0], sizes = [16, 16, 12], strides = [1, 1, 1]} : vector<18x16x12xbf16> to vector<16x16x12xbf16>
    %5 = tpu.concatenate %2, %3, %4 in 2 : vector<16x16x12xbf16>, vector<16x16x12xbf16>, vector<16x16x12xbf16> -> vector<16x16x36xbf16>
    %6 = vector.shape_cast %5 : vector<16x16x36xbf16> to vector<256x36xbf16>
    %c0_3 = arith.constant 0 : index
    %c0_4 = arith.constant 0 : index
    %7 = vector.load %arg3[%c0_3, %c0_4] : memref<8x36xbf16, #tpu.memory_space<vmem>>, vector<8x36xbf16>
    %cst = arith.constant dense<0.000000e+00> : vector<8x256xf32>
    %8 = tpu.matmul %7, %6, %cst {dimension_numbers = #tpu.dot_dimension_numbers<[1], [1], [0], [0], [0, 0, 1, 0], [], []>} : vector<8x36xbf16>, vector<256x36xbf16>, vector<8x256xf32> -> vector<8x256xf32>
    %cst_5 = arith.constant dense<0.000000e+00> : vector<8xf32>
    %9 = vector.multi_reduction <add>, %8, %cst_5 [1] : vector<8x256xf32> to vector<8xf32>
    %10 = vector.shape_cast %9 : vector<8xf32> to vector<8x1xf32>
    %cst_6 = arith.constant 3.906250e-03 : f32
    %11 = vector.broadcast %cst_6 : f32 to vector<8x1xf32>
    %12 = arith.mulf %10, %11 : vector<8x1xf32>
    %13 = vector.broadcast %12 : vector<8x1xf32> to vector<8x256xf32>
    %14 = arith.subf %8, %13 : vector<8x256xf32>
    %15 = arith.mulf %14, %14 : vector<8x256xf32>
    %cst_7 = arith.constant dense<0.000000e+00> : vector<8xf32>
    %16 = vector.multi_reduction <add>, %15, %cst_7 [1] : vector<8x256xf32> to vector<8xf32>
    %17 = vector.shape_cast %16 : vector<8xf32> to vector<8x1xf32>
    %c0_8 = arith.constant 0 : index
    %c0_9 = arith.constant 0 : index
    %c0_10 = arith.constant 0 : index
    %18 = vector.load %arg5[%c0_8, %c0_9, %c0_10] : memref<1x8x2xf32, #tpu.memory_space<vmem>>, vector<1x8x1xf32>
    %19 = vector.shape_cast %18 : vector<1x8x1xf32> to vector<8x1xf32>
    %20 = vector.shape_cast %10 : vector<8x1xf32> to vector<1x8x1xf32>
    tpu.vector_store %arg5[%c0_8, %c0_9, %c0_10], %20 {strides = array<i32>} : memref<1x8x2xf32, #tpu.memory_space<vmem>>, vector<1x8x1xf32>,
    %c0_11 = arith.constant 0 : index
    %c0_12 = arith.constant 0 : index
    %c1 = arith.constant 1 : index
    %21 = vector.load %arg5[%c0_11, %c0_12, %c1] : memref<1x8x2xf32, #tpu.memory_space<vmem>>, vector<1x8x1xf32>
    %22 = vector.shape_cast %21 : vector<1x8x1xf32> to vector<8x1xf32>
    %23 = vector.shape_cast %17 : vector<8x1xf32> to vector<1x8x1xf32>
    tpu.vector_store %arg5[%c0_11, %c0_12, %c1], %23 {strides = array<i32>} : memref<1x8x2xf32, #tpu.memory_space<vmem>>, vector<1x8x1xf32>,
    %24 = arith.truncf %8 : vector<8x256xf32> to vector<8x256xbf16>
    %c0_13 = arith.constant 0 : index
    %c0_14 = arith.constant 0 : index
    %c0_15 = arith.constant 0 : index
    %25 = vector.load %arg4[%c0_13, %c0_14, %c0_15] : memref<1x8x256xbf16, #tpu.memory_space<vmem>>, vector<1x8x256xbf16>
    %26 = vector.shape_cast %25 : vector<1x8x256xbf16> to vector<8x256xbf16>
    %27 = vector.shape_cast %24 : vector<8x256xbf16> to vector<1x8x256xbf16>
    tpu.vector_store %arg4[%c0_13, %c0_14, %c0_15], %27 {strides = array<i32>} : memref<1x8x256xbf16, #tpu.memory_space<vmem>>, vector<1x8x256xbf16>,
    return
  }
  func.func @transform_0(%arg0: i32, %arg1: i32) -> (i32, i32, i32, i32) {
    %c1_i32 = arith.constant 1 : i32
    %0 = arith.muli %arg0, %c1_i32 : i32
    %1 = arith.addi %0, %arg1 : i32
    %c0_i32 = arith.constant 0 : i32
    %c0_i32_0 = arith.constant 0 : i32
    %c0_i32_1 = arith.constant 0 : i32
    %c0_i32_2 = arith.constant 0 : i32
    return %1, %c0_i32, %c0_i32_0, %c0_i32_1 : i32, i32, i32, i32
  }
  func.func @transform_1(%arg0: i32, %arg1: i32) -> (i32, i32) {
    %c0_i32 = arith.constant 0 : i32
    %c0_i32_0 = arith.constant 0 : i32
    %c0_i32_1 = arith.constant 0 : i32
    return %c0_i32, %c0_i32_0 : i32, i32
  }
  func.func @transform_2(%arg0: i32, %arg1: i32) -> (i32, i32, i32) {
    %c0_i32 = arith.constant 0 : i32
    %c0_i32_0 = arith.constant 0 : i32
    return %arg0, %c0_i32, %arg1 : i32, i32, i32
  }
  func.func @transform_3(%arg0: i32, %arg1: i32) -> (i32, i32, i32) {
    %c1_i32 = arith.constant 1 : i32
    %0 = arith.muli %arg0, %c1_i32 : i32
    %1 = arith.addi %0, %arg1 : i32
    %c0_i32 = arith.constant 0 : i32
    %c0_i32_0 = arith.constant 0 : i32
    %c0_i32_1 = arith.constant 0 : i32
    return %1, %c0_i32, %c0_i32_0 : i32, i32, i32
  }
}

module attributes {stable_mosaic.version = 11 : i64} {
  func.func @_mcrelu_bn_kernel(%arg0: i32, %arg1: i32, %arg2: memref<1x8x256xbf16, #tpu.memory_space<vmem>>, %arg3: memref<8x4xf32, #tpu.memory_space<vmem>>, %arg4: memref<1x16x256xf32, #tpu.memory_space<vmem>>) attributes {dimension_semantics = [#tpu.dimension_semantics<parallel>, #tpu.dimension_semantics<parallel>], iteration_bounds = array<i64: 2, 1>, scalar_prefetch = 0 : i64, scratch_operands = 0 : i64, tpu.core_type = #tpu.core_type<tc>, window_params = [{transform_indices = @transform_0, window_bounds = array<i64: 1, 8, 256>}, {pipeline_mode = #tpu.pipeline_mode<synchronous>, transform_indices = @transform_1, window_bounds = array<i64: 8, 4>}, {transform_indices = @transform_2, window_bounds = array<i64: 1, 16, 256>}]} {
    %c0 = arith.constant 0 : index
    %c0_0 = arith.constant 0 : index
    %c0_1 = arith.constant 0 : index
    %0 = vector.load %arg2[%c0, %c0_0, %c0_1] : memref<1x8x256xbf16, #tpu.memory_space<vmem>>, vector<1x8x256xbf16>
    %1 = vector.shape_cast %0 : vector<1x8x256xbf16> to vector<8x256xbf16>
    %2 = arith.extf %1 : vector<8x256xbf16> to vector<8x256xf32>
    %c0_2 = arith.constant 0 : index
    %c0_3 = arith.constant 0 : index
    %3 = vector.load %arg3[%c0_2, %c0_3] : memref<8x4xf32, #tpu.memory_space<vmem>>, vector<8x4xf32>
    %4 = vector.extract_strided_slice %3 {offsets = [0, 0], sizes = [8, 1], strides = [1, 1]} : vector<8x4xf32> to vector<8x1xf32>
    %5 = vector.broadcast %4 : vector<8x1xf32> to vector<8x256xf32>
    %6 = arith.mulf %2, %5 : vector<8x256xf32>
    %7 = vector.extract_strided_slice %3 {offsets = [0, 1], sizes = [8, 1], strides = [1, 1]} : vector<8x4xf32> to vector<8x1xf32>
    %8 = vector.broadcast %7 : vector<8x1xf32> to vector<8x256xf32>
    %9 = arith.addf %6, %8 : vector<8x256xf32>
    %10 = vector.extract_strided_slice %3 {offsets = [0, 2], sizes = [8, 1], strides = [1, 1]} : vector<8x4xf32> to vector<8x1xf32>
    %11 = vector.broadcast %10 : vector<8x1xf32> to vector<8x256xf32>
    %12 = arith.mulf %2, %11 : vector<8x256xf32>
    %13 = vector.extract_strided_slice %3 {offsets = [0, 3], sizes = [8, 1], strides = [1, 1]} : vector<8x4xf32> to vector<8x1xf32>
    %14 = vector.broadcast %13 : vector<8x1xf32> to vector<8x256xf32>
    %15 = arith.addf %12, %14 : vector<8x256xf32>
    %cst = arith.constant 0.000000e+00 : f32
    %16 = vector.broadcast %cst : f32 to vector<8x256xf32>
    %17 = arith.maximumf %9, %16 : vector<8x256xf32>
    %cst_4 = arith.constant 0.000000e+00 : f32
    %18 = vector.broadcast %cst_4 : f32 to vector<8x256xf32>
    %19 = arith.maximumf %15, %18 : vector<8x256xf32>
    %c0_5 = arith.constant 0 : index
    %c0_6 = arith.constant 0 : index
    %c0_7 = arith.constant 0 : index
    %20 = vector.load %arg4[%c0_5, %c0_6, %c0_7] : memref<1x16x256xf32, #tpu.memory_space<vmem>>, vector<1x8x256xf32>
    %21 = vector.shape_cast %20 : vector<1x8x256xf32> to vector<8x256xf32>
    %22 = vector.shape_cast %17 : vector<8x256xf32> to vector<1x8x256xf32>
    tpu.vector_store %arg4[%c0_5, %c0_6, %c0_7], %22 {strides = array<i32>} : memref<1x16x256xf32, #tpu.memory_space<vmem>>, vector<1x8x256xf32>,
    %c0_8 = arith.constant 0 : index
    %c8 = arith.constant 8 : index
    %c0_9 = arith.constant 0 : index
    %23 = vector.load %arg4[%c0_8, %c8, %c0_9] : memref<1x16x256xf32, #tpu.memory_space<vmem>>, vector<1x8x256xf32>
    %24 = vector.shape_cast %23 : vector<1x8x256xf32> to vector<8x256xf32>
    %25 = vector.shape_cast %19 : vector<8x256xf32> to vector<1x8x256xf32>
    tpu.vector_store %arg4[%c0_8, %c8, %c0_9], %25 {strides = array<i32>} : memref<1x16x256xf32, #tpu.memory_space<vmem>>, vector<1x8x256xf32>,
    return
  }
  func.func @transform_0(%arg0: i32, %arg1: i32) -> (i32, i32, i32) {
    %c0_i32 = arith.constant 0 : i32
    %c0_i32_0 = arith.constant 0 : i32
    return %arg0, %c0_i32, %arg1 : i32, i32, i32
  }
  func.func @transform_1(%arg0: i32, %arg1: i32) -> (i32, i32) {
    %c0_i32 = arith.constant 0 : i32
    %c0_i32_0 = arith.constant 0 : i32
    %c0_i32_1 = arith.constant 0 : i32
    return %c0_i32, %c0_i32_0 : i32, i32
  }
  func.func @transform_2(%arg0: i32, %arg1: i32) -> (i32, i32, i32) {
    %c0_i32 = arith.constant 0 : i32
    %c0_i32_0 = arith.constant 0 : i32
    return %arg0, %c0_i32, %arg1 : i32, i32, i32
  }
}

</mosaic_0001>

<bundles_post_ra>
// kernel: mcrelu_base_forward.3
= control target key start
LH: loop header
LB: loop body
LE: loop exit
PB: predicated region body
PF: predicated region fallthrough
CT: control target
= control target key end

     0   :  { %s396_s9 = smov 0   ;;  %s398_s10 = smov 0   ;;  %s432_s0 = inlined_call_operand.vmem [shape: bf16[2,8,256], index: 0, kind: input, shape index: {}]   ;;  %s433_s1 = inlined_call_operand.vmem [shape: f32[8,4], index: 1, kind: input, shape index: {}]   ;;  %s434_s2 = inlined_call_operand.vmem [shape: f32[2,16,256], index: 2, kind: output, shape index: {}]  }
   0x1   :  { %s400_s11 = smov 0  }
   0x2 LB: > { %s24_s12 = sadd.s32 1, %s371_s10  ;;  %p311_p0 = scmp.ge.s32.totalorder %s375_s11, 1  ;;  %s375_s11 = sphi %s400_s11, %s12_s11   ;;  %s371_s10 = sphi %s398_s10, %s436_s10   ;;  %s367_s9 = sphi %s396_s9, %s435_s9  }
   0x3   : > { %p26_p1 = scmp.ge.s32.totalorder %s24_s12, 2  ;;  %p133_p2 = scmp.lt.s32.totalorder %s375_s11, 3 }
   0x5   : > { %s438_s12 = smov (%p26_p1, %s24_s12), 0  ;;  %p134_p3 = pnand %p311_p0, %p133_p2 }
   0x6   : > { %p164_p4 = scmp.lt.s32.totalorder (!%p134_p3), %s367_s9, 1 }
   0x7   : > { %137 = sbr.rel (%p134_p3) target bundleno = 146 (0x92), region = 28 }
   0xc   : > { %v186_v0 = vld [vmem:[%s433_s1] sm:$0xff]  ;;  %v377_v1 = vmov 0   ;;  %v378_v2 = vmov 1   ;;  %v379_v3 = vmov 2   ;;  %v380_v4 = vmov 3   ;;  %s440_s9 = smov (!%p164_p4, %s367_s9), 1 }
   0xd   : > { %348 = vset.pattern.permute.xlu0 %v377_v1  ;;  %350 = vset.pattern.permute.xlu1 %v378_v2  ;;  %s318_s15 = sshll.u32 %s440_s9, 3  ;;  %s319_s19 = sshll.u32 %s440_s9, 5 }
   0xe   : > { %189 = vperm.xlu0 %348, %v186_v0   ;;  %195 = vperm.xlu1 %350, %v186_v0   ;;  %s171_s18 = scalar_lea.vmem %s432_s0, %s318_s15  ;;  %s181_s22 = scalar_lea.vmem %s434_s2, %s319_s19 }
   0xf   : > { %v183_v5 = vld [vmem:[%s171_s18] sm:$0xff] }
  0x10   : > { %v184_v6 = vunpack.c.l.bf16 %v183_v5  ;;  %v185_v7 = vunpack.c.h.bf16 %v183_v5 }
  0x16   : > { %349 = vset.pattern.permute.xlu0 %v379_v3  ;;  %351 = vset.pattern.permute.xlu1 %v380_v4 }
  0x17   : > { %201 = vperm.xlu0 %349, %v186_v0   ;;  %207 = vperm.xlu1 %351, %v186_v0  }
  0x1f   : > { %352 = vset.pattern.permute.xlu0 %v380_v4 }
  0x80   : > { %v190_v8 = vpop.permute.xlu0 %189  ;;  %v196_v9 = vpop.permute.xlu1 %195 }
  0x81   : > { %v192_v10 = vmul.f32 %v190_v8, %v184_v6  ;;  %v193_v11 = vmul.f32 %v190_v8, %v185_v7 }
  0x83   : > { %v198_v12 = vadd.f32 %v196_v9, %v192_v10  ;;  %v199_v13 = vadd.f32 %v196_v9, %v193_v11 }
  0x85   : > { %v212_v14 = vmax.f32 %v198_v12, 0.0  ;;  %v213_v15 = vmax.f32 %v199_v13, 0.0 }
  0x87   : > { %216 = vst [vmem:[%s181_s22] sm:$0xff] %v212_v14 }
  0x88   : > { %217 = vst [vmem:[%s181_s22 + $0x8] sm:$0xff] %v213_v15 }
  0x89   : > { %v202_v16 = vpop.permute.xlu0 %201  ;;  %v208_v17 = vpop.permute.xlu1 %207 }
  0x8a   : > { %v204_v18 = vmul.f32 %v202_v16, %v184_v6  ;;  %v205_v19 = vmul.f32 %v202_v16, %v185_v7 }
  0x8c   : > { %v210_v20 = vadd.f32 %v208_v17, %v204_v18  ;;  %v211_v21 = vadd.f32 %v208_v17, %v205_v19 }
  0x8e   : > { %v214_v22 = vmax.f32 %v210_v20, 0.0  ;;  %v215_v23 = vmax.f32 %v211_v21, 0.0 }
  0x90   : > { %218 = vst [vmem:[%s181_s22 + $0x10] sm:$0xff] %v214_v22 }
  0x91   : > { %219 = vst [vmem:[%s181_s22 + $0x18] sm:$0xff] %v215_v23 }
  0x92 PF: > { %s12_s11 = sadd.s32 1, %s375_s11   ;;  %s435_s9 = smov %s371_s10 }
  0x93   : > { %p9_p5 = scmp.ge.s32.totalorder %s12_s11, 4   ;;  %s436_s10 = smov %s438_s12 }
  0x95   :  { %11 = sbr.rel (!%p9_p5) target bundleno = 2 (0x2), region = 58 }

// kernel: mcrelu_base_forward.2
= control target key start
LH: loop header
LB: loop body
LE: loop exit
PB: predicated region body
PF: predicated region fallthrough
CT: control target
= control target key end

     0   :  { %s861_s12 = smov 0   ;;  %s863_s13 = smov 0   ;;  %s1055_s0 = inlined_call_operand.vmem [shape: bf16[2,18,16,12], index: 0, kind: input, shape index: {}]   ;;  %s1056_s1 = inlined_call_operand.vmem [shape: bf16[8,36], index: 1, kind: input, shape index: {}]   ;;  %s1057_s2 = inlined_call_operand.vmem [shape: bf16[2,8,256], index: 2, kind: output, shape index: {0}]   ;;  %s1058_s3 = inlined_call_operand.vmem [shape: f32[2,8,2], index: 3, kind: output, shape index: {1}]  }
   0x1   :  { %s865_s14 = smov 0  }
   0x2 LB: > { %s26_s15 = sadd.s32 1, %s833_s13  ;;  %p688_p0 = scmp.ge.s32.totalorder %s837_s14, 1  ;;  %s837_s14 = sphi %s865_s14, %s14_s14   ;;  %s833_s13 = sphi %s863_s13, %s1060_s13   ;;  %s829_s12 = sphi %s861_s12, %s1059_s12  }
   0x3   : > { %p28_p1 = scmp.ge.s32.totalorder %s26_s15, 2  ;;  %p160_p2 = scmp.lt.s32.totalorder %s837_s14, 3 }
   0x5   : > { %s1062_s15 = smov (%p28_p1, %s26_s15), 0  ;;  %p161_p3 = pnand %p688_p0, %p160_p2 }
   0x6   : > { %p195_p4 = scmp.lt.s32.totalorder (!%p161_p3), %s829_s12, 1  ;;  %s839_s20 = smov (!%p161_p3), 24  }
   0x7   : > { %164 = sbr.rel (%p161_p3) target bundleno = 590 (0x24e), region = 28  ;;  %s840_s21 = smov (!%p161_p3), 12  }
   0xc   : > { %s1064_s12 = smov (!%p195_p4, %s829_s12), 1  ;;  %vm407_vm0 = vcmask 97280   ;;  %vm456_vm1 = vcmask 195584   ;;  %vm490_vm2 = vcmask 293888   ;;  %vm563_vm3 = vcmask 7168  }
   0xd   : > { %s788_s16 = smul.u32 144, %s1064_s12  ;;  %s769_s24 = sshll.u32 %s1064_s12, 3  ;;  %vm565_vm4 = vcmask 15368  }
   0xe   : > { %s209_s27 = scalar_lea.vmem %s1057_s2, %s769_s24  ;;  %s215_s30 = scalar_lea.vmem %s1058_s3, %s769_s24 }
   0xf   : > { %s885_s19 = scalar_lea.vmem %s1055_s0, %s788_s16 }
  0x10   : > { %v888_v0 = vld [vmem:[%s885_s19 + $0x48] sm:$0xff]  ;;  %v891_v1 = vld [vmem:[%s885_s19 + $0x40] sm:$0xff]  ;;  %v777_v2 = vld [vmem:[%s885_s19 + $0x38] sm:$0xff] }
  0x11   : > { %389 = vrot.lane.b32.xlu1 %v888_v0, %s839_s20  ;;  %352 = vrot.lane.b32.xlu0 %v891_v1, %s840_s21  ;;  %v787_v3 = vld [vmem:[%s885_s19 + $0x88] sm:$0xff]  ;;  %v786_v4 = vld [vmem:[%s885_s19 + $0x80] sm:$0xff] }
  0x12   : > { %350 = vrot.lane.b32.xlu2 %v777_v2, %s840_s21  ;;  %v785_v5 = vld [vmem:[%s885_s19 + $0x78] sm:$0xff]  ;;  %v776_v6 = vld [vmem:[%s885_s19 + $0x30] sm:$0xff]  ;;  %v915_v8 = vld [vmem:[%s885_s19 + $0x68] sm:$0xff] }
  0x13   : > { %v784_v7 = vld [vmem:[%s885_s19 + $0x70] sm:$0xff]  ;;  %v775_v9 = vld [vmem:[%s885_s19 + $0x28] sm:$0xff]  ;;  %v923_v10 = vld [vmem:[%s885_s19 + $0x20] sm:$0xff] }
  0x14   : > { %v926_v11 = vld [vmem:[%s885_s19 + $0x60] sm:$0xff]  ;;  %v934_v12 = vld [vmem:[%s885_s19 + $0x18] sm:$0xff]  ;;  %v951_v14 = vld [vmem:[%s885_s19 + $0x50] sm:$0xff] }
  0x15   : > { %v942_v13 = vld [vmem:[%s885_s19 + $0x58] sm:$0xff]  ;;  %v954_v15 = vld [vmem:[%s885_s19 + $0x10] sm:$0xff]  ;;  %v963_v16 = vld [vmem:[%s885_s19 + $0x8] sm:$0xff] }
  0x19   : > { %405 = vrot.lane.b32.xlu1 %v787_v3, %s839_s20  ;;  %368 = vrot.lane.b32.xlu0 %v786_v4, %s840_s21 }
  0x1a   : > { %366 = vrot.lane.b32.xlu2 %v785_v5, %s840_s21 }
  0x21   : > { %403 = vrot.lane.b32.xlu1 %v786_v4, %s839_s20  ;;  %387 = vrot.lane.b32.xlu0 %v891_v1, %s839_s20 }
  0x22   : > { %348 = vrot.lane.b32.xlu2 %v776_v6, %s840_s21 }
  0x29   : > { %364 = vrot.lane.b32.xlu0 %v784_v7, %s840_s21  ;;  %385 = vrot.lane.b32.xlu1 %v777_v2, %s839_s20 }
  0x2a   : > { %401 = vrot.lane.b32.xlu2 %v785_v5, %s839_s20 }
  0x31   : > { %362 = vrot.lane.b32.xlu1 %v915_v8, %s840_s21  ;;  %346 = vrot.lane.b32.xlu0 %v775_v9, %s840_s21 }
  0x32   : > { %383 = vrot.lane.b32.xlu2 %v776_v6, %s839_s20 }
  0x39   : > { %399 = vrot.lane.b32.xlu0 %v784_v7, %s839_s20  ;;  %344 = vrot.lane.b32.xlu1 %v923_v10, %s840_s21 }
  0x3a   : > { %360 = vrot.lane.b32.xlu2 %v926_v11, %s840_s21 }
  0x41   : > { %381 = vrot.lane.b32.xlu0 %v775_v9, %s839_s20  ;;  %397 = vrot.lane.b32.xlu1 %v915_v8, %s839_s20 }
  0x42   : > { %342 = vrot.lane.b32.xlu2 %v934_v12, %s840_s21 }
  0x49   : > { %358 = vrot.lane.b32.xlu0 %v942_v13, %s840_s21  ;;  %379 = vrot.lane.b32.xlu1 %v923_v10, %s839_s20 }
  0x4a   : > { %395 = vrot.lane.b32.xlu2 %v926_v11, %s839_s20 }
  0x51   : > { %356 = vrot.lane.b32.xlu1 %v951_v14, %s840_s21  ;;  %340 = vrot.lane.b32.xlu0 %v954_v15, %s840_s21 }
  0x52   : > { %377 = vrot.lane.b32.xlu2 %v934_v12, %s839_s20 }
  0x59   : > { %393 = vrot.lane.b32.xlu0 %v942_v13, %s839_s20  ;;  %338 = vrot.lane.b32.xlu1 %v963_v16, %s840_s21 }
  0x5a   : > { %354 = vrot.lane.b32.xlu2 %v888_v0, %s840_s21 }
  0x61   : > { %375 = vrot.lane.b32.xlu0 %v954_v15, %s839_s20  ;;  %391 = vrot.lane.b32.xlu1 %v951_v14, %s839_s20 }
  0x6c   : > { %v351_v17 = vpop.permute.xlu2 %350 }
  0x6d   : > { %v428_v32 = vsel %vm407_vm0, %v776_v6, %v351_v17 }
  0x74   : > { %v367_v18 = vpop.permute.xlu2 %366 }
  0x75   : > { %v452_v31 = vsel %vm407_vm0, %v784_v7, %v367_v18 }
  0x7c   : > { %v349_v24 = vpop.permute.xlu2 %348 }
  0x7d   : > { %v425_v39 = vsel %vm407_vm0, %v775_v9, %v349_v24 }
  0x83   : > { %v390_v19 = vpop.permute.xlu1 %389  ;;  %v353_v20 = vpop.permute.xlu0 %352 }
  0x84   : > { %v431_v21 = vsel %vm407_vm0, %v777_v2, %v353_v20  ;;  %v402_v30 = vpop.permute.xlu2 %401 }
  0x85   : > { %v472_v22 = vsel %vm456_vm1, %v431_v21, %v390_v19 }
  0x86   : > { %v508_v23 = vsel %vm490_vm2, %v472_v22, 0 }
  0x87   : > { %526 = vmatpush.bf16.xpose.msra.mxu0 %v508_v23 }
  0x8b   : > { %v406_v25 = vpop.permute.xlu1 %405  ;;  %v369_v26 = vpop.permute.xlu0 %368 }
  0x8c   : > { %v455_v27 = vsel %vm407_vm0, %v785_v5, %v369_v26  ;;  %v384_v40 = vpop.permute.xlu2 %383 }
  0x8d   : > { %v488_v28 = vsel %vm456_vm1, %v455_v27, %v406_v25 }
  0x8e   : > { %v524_v29 = vsel %vm490_vm2, %v488_v28, 0  ;;  %v770_v28 = vld [vmem:[%s885_s19] sm:$0xff] }
  0x8f   : > { %539 = vmatpush.bf16.xpose.msra.mxu1 %v524_v29 }
  0x93   : > { %v404_v33 = vpop.permute.xlu1 %403  ;;  %v388_v34 = vpop.permute.xlu0 %387 }
  0x94   : > { %v470_v35 = vsel %vm456_vm1, %v428_v32, %v388_v34  ;;  %v486_v36 = vsel %vm456_vm1, %v452_v31, %v404_v33  ;;  %v361_v51 = vpop.permute.xlu2 %360 }
  0x95   : > { %v506_v37 = vsel %vm490_vm2, %v470_v35, 0  ;;  %v522_v38 = vsel %vm490_vm2, %v486_v36, 0  ;;  %v443_v60 = vsel %vm407_vm0, %v942_v13, %v361_v51  ;;  %v489_v35 = vld [vmem:[%s1056_s1] sm:$0xf] }
  0x96   : > { %527 = vmatpush.bf16.xpose.msra.mxu0 %v506_v37 }
  0x97   : > { %540 = vmatpush.bf16.xpose.msra.mxu1 %v522_v38 }
  0x9b   : > { %v365_v41 = vpop.permute.xlu0 %364  ;;  %v386_v42 = vpop.permute.xlu1 %385 }
  0x9c   : > { %v449_v43 = vsel %vm407_vm0, %v915_v8, %v365_v41  ;;  %v468_v44 = vsel %vm456_vm1, %v425_v39, %v386_v42  ;;  %v343_v59 = vpop.permute.xlu2 %342 }
  0x9d   : > { %v504_v45 = vsel %vm490_vm2, %v468_v44, 0  ;;  %v484_v46 = vsel %vm456_vm1, %v449_v43, %v402_v30  ;;  %v416_v7 = vsel %vm407_vm0, %v954_v15, %v343_v59 }
  0x9e   : > { %528 = vmatpush.bf16.xpose.msra.mxu0 %v504_v45  ;;  %v520_v47 = vsel %vm490_vm2, %v484_v46, 0 }
  0x9f   : > { %541 = vmatpush.bf16.xpose.msra.mxu1 %v520_v47 }
  0xa3   : > { %v363_v48 = vpop.permute.xlu1 %362  ;;  %v347_v49 = vpop.permute.xlu0 %346 }
  0xa4   : > { %v422_v50 = vsel %vm407_vm0, %v923_v10, %v347_v49  ;;  %v446_v54 = vsel %vm407_vm0, %v926_v11, %v363_v48  ;;  %v396_v6 = vpop.permute.xlu2 %395 }
  0xa5   : > { %v466_v52 = vsel %vm456_vm1, %v422_v50, %v384_v40 }
  0xa6   : > { %v502_v53 = vsel %vm490_vm2, %v466_v52, 0 }
  0xa7   : > { %529 = vmatpush.bf16.xpose.msra.mxu0 %v502_v53 }
  0xab   : > { %v400_v55 = vpop.permute.xlu0 %399  ;;  %v345_v56 = vpop.permute.xlu1 %344 }
  0xac   : > { %v482_v57 = vsel %vm456_vm1, %v446_v54, %v400_v55  ;;  %v419_v61 = vsel %vm407_vm0, %v934_v12, %v345_v56  ;;  %v378_v18 = vpop.permute.xlu2 %377 }
  0xad   : > { %v518_v58 = vsel %vm490_vm2, %v482_v57, 0 }
  0xae   : > { %542 = vmatpush.bf16.xpose.msra.mxu1 %v518_v58 }
  0xb3   : > { %v382_v62 = vpop.permute.xlu0 %381  ;;  %v398_v63 = vpop.permute.xlu1 %397 }
  0xb4   : > { %v464_v2 = vsel %vm456_vm1, %v419_v61, %v382_v62  ;;  %v480_v3 = vsel %vm456_vm1, %v443_v60, %v398_v63  ;;  %v355_v27 = vpop.permute.xlu2 %354 }
  0xb5   : > { %v500_v4 = vsel %vm490_vm2, %v464_v2, 0  ;;  %v516_v5 = vsel %vm490_vm2, %v480_v3, 0 }
  0xb6   : > { %530 = vmatpush.bf16.xpose.msra.mxu0 %v500_v4  ;;  %543 = vmatpush.bf16.xpose.msra.mxu1 %v516_v5 }
  0xbb   : > { %v359_v8 = vpop.permute.xlu0 %358  ;;  %v380_v9 = vpop.permute.xlu1 %379 }
  0xbc   : > { %v440_v10 = vsel %vm407_vm0, %v951_v14, %v359_v8  ;;  %v462_v11 = vsel %vm456_vm1, %v416_v7, %v380_v9 }
  0xbd   : > { %v498_v12 = vsel %vm490_vm2, %v462_v11, 0  ;;  %v478_v13 = vsel %vm456_vm1, %v440_v10, %v396_v6 }
  0xbe   : > { %531 = vmatpush.bf16.xpose.msra.mxu0 %v498_v12  ;;  %v514_v17 = vsel %vm490_vm2, %v478_v13, 0 }
  0xbf   : > { %544 = vmatpush.bf16.xpose.msra.mxu1 %v514_v17 }
  0xc3   : > { %v357_v19 = vpop.permute.xlu1 %356  ;;  %v341_v20 = vpop.permute.xlu0 %340 }
  0xc4   : > { %v413_v15 = vsel %vm407_vm0, %v963_v16, %v341_v20  ;;  %v437_v22 = vsel %vm407_vm0, %v888_v0, %v357_v19  ;;  %v434_v16 = vsel %vm407_vm0, %v891_v1, %v355_v27 }
  0xc5   : > { %v460_v21 = vsel %vm456_vm1, %v413_v15, %v378_v18 }
  0xc6   : > { %v496_v14 = vsel %vm490_vm2, %v460_v21, 0 }
  0xc7   : > { %532 = vmatpush.bf16.xpose.msra.mxu0 %v496_v14 }
  0xcb   : > { %v394_v23 = vpop.permute.xlu0 %393  ;;  %v339_v24 = vpop.permute.xlu1 %338 }
  0xcc   : > { %v476_v25 = vsel %vm456_vm1, %v437_v22, %v394_v23  ;;  %v410_v29 = vsel %vm407_vm0, %v770_v28, %v339_v24 }
  0xcd   : > { %v512_v26 = vsel %vm490_vm2, %v476_v25, 0 }
  0xce   : > { %545 = vmatpush.bf16.xpose.msra.mxu1 %v512_v26 }
  0xd3   : > { %v376_v30 = vpop.permute.xlu0 %375  ;;  %v392_v31 = vpop.permute.xlu1 %391 }
  0xd4   : > { %v458_v32 = vsel %vm456_vm1, %v410_v29, %v376_v30  ;;  %v474_v0 = vsel %vm456_vm1, %v434_v16, %v392_v31 }
  0xd5   : > { %v494_v33 = vsel %vm490_vm2, %v458_v32, 0  ;;  %v510_v34 = vsel %vm490_vm2, %v474_v0, 0 }
  0xd6   : > { %533 = vmatpush.bf16.xpose.msra.mxu0 %v494_v33  ;;  %546 = vmatpush.bf16.xpose.msra.mxu1 %v510_v34 }
  0xdd   : > { %765 = vmatmul.msk.bf16.vlgmr.msra.gmra.mxu0 %vm490_vm2, %v489_v35  ;;  %766 = vmatmul.msk.bf16.vlgmr.msra.gmra.mxu1 %vm490_vm2, %v489_v35 }
 0x15a   : > { %v535_v1 = vpop.f32.mrf.mxu0  ;;  %v548_v36 = vpop.f32.mrf.mxu1 }
 0x15b   : > { %v567_v37 = vpack.c.bf16 %v548_v36, %v535_v1  ;;  %v552_v38 = vadd.f32 %v548_v36, %v535_v1 }
 0x15d   : > { %553 = vadd.xlane.f32.xlu2 %v552_v38  ;;  %568 = vst [vmem:[%s209_s27] sm:$0xff] %v567_v37 }
 0x162   : > { %v537_v39 = vpop.f32.mrf.mxu0  ;;  %v550_v40 = vpop.f32.mrf.mxu1 }
 0x1d0   : > { %v554_v41 = vpop.xlane.xlu2 %553 }
 0x1d1   : > { %v555_v42 = vmul.f32 0.00390625, %v554_v41  ;;  %564 = vst.msk [vmem:[%s215_s30] sm:$0xff] %vm563_vm3, %v554_v41 }
 0x1d3   : > { %v556_v43 = vsub.f32 %v535_v1, %v555_v42  ;;  %v557_v44 = vsub.f32 %v548_v36, %v555_v42 }
 0x1d5   : > { %v558_v45 = vmul.f32 %v556_v43, %v556_v43  ;;  %v559_v46 = vmul.f32 %v557_v44, %v557_v44 }
 0x1d7   : > { %v560_v47 = vadd.f32 %v559_v46, %v558_v45 }
 0x1d9   : > { %561 = vadd.xlane.f32.xlu0 %v560_v47 }
 0x24c   : > { %v562_v48 = vpop.xlane.xlu0 %561 }
 0x24d   : > { %566 = vst.msk [vmem:[%s215_s30] sm:$0xff] %vm565_vm4, %v562_v48 }
 0x24e PF: > { %s14_s14 = sadd.s32 1, %s837_s14   ;;  %s1059_s12 = smov %s833_s13 }
 0x24f   : > { %p11_p5 = scmp.ge.s32.totalorder %s14_s14, 4   ;;  %s1060_s13 = smov %s1062_s15 }
 0x251   :  { %13 = sbr.rel (!%p11_p5) target bundleno = 2 (0x2), region = 70 }

</bundles_post_ra>
